<compile_context>
chip_gen: v6e
topology: v6e:2x2x1
jax: 0.10.0
libtpu: 0.0.40
codegen_flags: <defaults>
</compile_context>

<pallas_src>
import functools

import jax
import jax.numpy as jnp
from jax.experimental import pallas as pl
from jax.experimental.pallas import tpu as pltpu


# ----------------------------------------------------------------------------- kernels
def _row_loss(logits_ref, targets_ref, w_ref):
    """Per-row weighted NLL for one (TB, C) tile.

    Returns ((TB,1) per-sample loss, (TB,1) per-sample class weight).
    """
    x_raw = logits_ref[...]                                  # raw dtype (bf16/f32)
    # Row max on the raw dtype (exact for bf16; half the vregs for that pass),
    # then widen once.
    m = jnp.max(x_raw, axis=1, keepdims=True).astype(jnp.float32)   # (TB, 1)
    x = x_raw.astype(jnp.float32)                            # widen in-kernel
    t = targets_ref[...]                                     # (TB, 1) int32
    tb, c = x.shape

    class_ids = jax.lax.broadcasted_iota(jnp.int32, (tb, c), 1)
    mask = (t == class_ids)                                  # one hot per row

    # z = x - m is consumed only by exp (not kept live across two reductions).
    lse = jnp.log(jnp.sum(jnp.exp(x - m), axis=1, keepdims=True))    # (TB, 1)

    # Pick the target logit from the un-shifted x; nll = (m + lse) - x[t].
    picked = jnp.sum(jnp.where(mask, x, 0.0), axis=1, keepdims=True)

    # In-kernel gather of the class weight (reuses `mask`; no wrapper w[targets]).
    w_row = w_ref[...].astype(jnp.float32)                   # (1, C) replicated
    sw = jnp.sum(jnp.where(mask, w_row, 0.0), axis=1, keepdims=True)

    per_sample = sw * (m + lse - picked)                     # = -w[t] * logp[t]
    return per_sample, sw


def _bce_partial_kernel(logits_ref, targets_ref, w_ref, loss_ref, wsum_ref, *,
                        rows, block_rows):
    """Per-tile partial sums for 'mean'/'sum' (grid axis stays fully parallel)."""
    per_sample, sw = _row_loss(logits_ref, targets_ref, w_ref)

    if rows % block_rows != 0:                               # static: mask ragged tail
        i = pl.program_id(0)
        row_ids = i * block_rows + jax.lax.broadcasted_iota(
            jnp.int32, per_sample.shape, 0)
        valid = row_ids < rows
        per_sample = jnp.where(valid, per_sample, 0.0)
        sw = jnp.where(valid, sw, 0.0)

    loss_ref[...] = jnp.broadcast_to(jnp.sum(per_sample), loss_ref.shape)
    wsum_ref[...] = jnp.broadcast_to(jnp.sum(sw), wsum_ref.shape)


def _bce_none_kernel(logits_ref, targets_ref, w_ref, out_ref):
    """reduction='none': per-sample loss, broadcast across 128 lanes so stores are
    unmasked full vregs and the output DMA is contiguous (wrapper slices [:, 0])."""
    per_sample, _ = _row_loss(logits_ref, targets_ref, w_ref)
    out_ref[...] = jnp.broadcast_to(per_sample, out_ref.shape)


# ----------------------------------------------------------------------------- sizing
def _vmem_capacity_bytes():
    """Per-generation VMEM capacity (v5e/v6e: 128 MiB, v7x: 64 MiB)."""
    try:
        info = pltpu.get_tpu_info()
        cap = getattr(info, "vmem_capacity_bytes", None)
        if cap:
            return int(cap)
    except Exception:
        pass
    return 128 * 1024 * 1024


def _pick_block_rows(batch, num_classes, itemsize, budget_bytes):
    """Batch-tile size under a generation-aware VMEM budget.

    Per-row bytes: double-buffered logits tile (lane-padded) + ~5 full-width
    f32/i32 intermediates (widened x, exp(z), class_ids, mask/select temporaries)
    + lane-padded double-buffered (TB,1) targets column.
    """
    c_pad = ((num_classes + 127) // 128) * 128
    per_row = c_pad * (2 * itemsize + 20) + 1024
    tb = budget_bytes // per_row
    tb = max(8, (tb // 8) * 8)

    if batch <= 16:
        return batch                                         # block dim == full dim

    # Keep >= 2 grid steps so both v7x TensorCores get work ("parallel" axis),
    # and never exceed the (8-rounded) array extent.
    half = (((batch + 1) // 2) + 7) // 8 * 8
    cap = max(8, (batch // 8) * 8)
    return max(8, min(tb, half, cap))


# ----------------------------------------------------------------------------- wrapper
def balanced_cross_entropy(logits, targets, *, weight_type='inverse', beta=0.9,
                           reduction='mean', epsilon=1e-6, block_rows=None):
    """JAX/Pallas equivalent of Balanced_CrossEntropy.forward.

    logits : [B, C] (f32 or bf16), targets : [B] integer labels in [0, C).
    Returns a scalar ('mean'/'sum') or [B] ('none'), always f32.
    """
    B, C = logits.shape
    targets = targets.astype(jnp.int32)

    # ---- class weights from the *global* batch (cheap O(B*C) vectorized one-hot
    #      sum — avoids the serialized TPU scatter-add) ----
    counts = jnp.sum(jax.nn.one_hot(targets, C, dtype=jnp.float32), axis=0) + epsilon
    if weight_type == 'inverse':
        w = 1.0 / counts
        w = w * (C / jnp.sum(w))
    elif weight_type == 'effective':
        eff = 1.0 - jnp.power(jnp.float32(beta), counts)
        w = (1.0 - beta) / (eff + epsilon)
        w = w / jnp.sum(w) * C
    else:
        w = jnp.ones_like(counts)
    w_2d = w.reshape(1, C).astype(jnp.float32)               # replicated to every tile

    # ---- generation-aware VMEM budget / tile size ----
    vmem_cap = _vmem_capacity_bytes()
    vmem_limit = int(min((vmem_cap * 3) // 4, 96 * 1024 * 1024))   # 96 MiB v5e/v6e, 48 MiB v7x
    budget = (vmem_limit * 2) // 3
    tb = block_rows or _pick_block_rows(B, C, jnp.dtype(logits.dtype).itemsize, budget)
    g = pl.cdiv(B, tb)

    targets_2d = targets.reshape(B, 1)

    in_specs = [
        pl.BlockSpec((tb, C), lambda i: (i, 0)),             # logits tile (pipelined)
        pl.BlockSpec((tb, 1), lambda i: (i, 0)),             # targets column
        pl.BlockSpec((1, C), lambda i: (0, 0)),              # class weights (replicated)
    ]
    cparams = pltpu.CompilerParams(
        dimension_semantics=("parallel",),
        vmem_limit_bytes=vmem_limit)

    if reduction == 'none':
        out = pl.pallas_call(
            _bce_none_kernel,
            out_shape=jax.ShapeDtypeStruct((B, 128), jnp.float32),
            grid=(g,),
            in_specs=in_specs,
            out_specs=pl.BlockSpec((tb, 128), lambda i: (i, 0)),
            compiler_params=cparams,
        )(logits, targets_2d, w_2d)
        return out[:, 0]

    if reduction not in ('mean', 'sum'):
        raise ValueError(f"unknown reduction: {reduction!r}")

    kernel = functools.partial(_bce_partial_kernel, rows=B, block_rows=tb)
    loss_parts, w_parts = pl.pallas_call(
        kernel,
        out_shape=(jax.ShapeDtypeStruct((g, 1, 128), jnp.float32),
                   jax.ShapeDtypeStruct((g, 1, 128), jnp.float32)),
        grid=(g,),
        in_specs=in_specs,
        out_specs=(pl.BlockSpec((1, 1, 128), lambda i: (i, 0, 0)),
                   pl.BlockSpec((1, 1, 128), lambda i: (i, 0, 0))),
        compiler_params=cparams,
    )(logits, targets_2d, w_2d)

    total = jnp.sum(loss_parts[:, 0, 0])
    if reduction == 'sum':
        return total
    # F.cross_entropy(weight=w, reduction='mean') == sum(w_i*nll_i) / sum(w_i)
    return total / jnp.sum(w_parts[:, 0, 0])


# ----------------------------------------------------------------------------- reference
def _reference(logits, targets, *, weight_type='inverse', beta=0.9,
               reduction='mean', epsilon=1e-6):
    """Pure-JAX reference mirroring the PyTorch module."""
    B, C = logits.shape
    logits = logits.astype(jnp.float32)
    onehot = jax.nn.one_hot(targets, C, dtype=jnp.float32)
    counts = onehot.sum(0) + epsilon
    if weight_type == 'inverse':
        w = 1.0 / counts
        w = w * (C / w.sum())
    elif weight_type == 'effective':
        eff = 1.0 - jnp.power(beta, counts)
        w = (1.0 - beta) / (eff + epsilon)
        w = w / w.sum() * C
    else:
        w = jnp.ones_like(counts)
    logp = jax.nn.log_softmax(logits, axis=-1)
    nll = -jnp.take_along_axis(logp, targets[:, None], axis=1)[:, 0]
    sw = w[targets]
    per = sw * nll
    if reduction == 'mean':
        return per.sum() / sw.sum()
    if reduction == 'sum':
        return per.sum()
    return per


# ----------------------------------------------------------------------------- main
if __name__ == "__main__":
    key = jax.random.PRNGKey(0)
    k1, k2, k3, k4 = jax.random.split(key, 4)

    ok = []

    # small shapes matching the module: logits [B, C], targets [B]
    B, C = 16, 8
    logits = jax.random.normal(k1, (B, C), dtype=jnp.float32)
    targets = jax.random.randint(k2, (B,), 0, 3, dtype=jnp.int32)  # imbalanced

    for wt in ('inverse', 'effective', None):
        for red in ('mean', 'sum', 'none'):
            got = jax.block_until_ready(
                balanced_cross_entropy(logits, targets, weight_type=wt,
                                       beta=0.9, reduction=red))
            ref = _reference(logits, targets, weight_type=wt, beta=0.9,
                             reduction=red)
            ok.append(bool(jnp.allclose(got, ref, rtol=1e-5, atol=1e-5)))

    # multi-tile grid + ragged tail masking + bf16 passthrough (explicit tile)
    B2, C2 = 300, 21
    logits2 = jax.random.normal(k3, (B2, C2), dtype=jnp.float32).astype(jnp.bfloat16)
    targets2 = jax.random.randint(k4, (B2,), 0, C2, dtype=jnp.int32)
    got2 = jax.block_until_ready(
        balanced_cross_entropy(logits2, targets2, weight_type='inverse',
                               reduction='mean', block_rows=64))
    ref2 = _reference(logits2, targets2, weight_type='inverse', reduction='mean')
    ok.append(bool(jnp.allclose(got2, ref2, rtol=2e-3, atol=2e-3)))

    # default generation-aware tile picking (ragged tail, mean + none paths)
    got3 = jax.block_until_ready(
        balanced_cross_entropy(logits2, targets2, weight_type='effective',
                               reduction='mean'))
    ref3 = _reference(logits2, targets2, weight_type='effective', reduction='mean')
    ok.append(bool(jnp.allclose(got3, ref3, rtol=2e-3, atol=2e-3)))

    got4 = jax.block_until_ready(
        balanced_cross_entropy(logits2, targets2, weight_type='inverse',
                               reduction='none'))
    ref4 = _reference(logits2, targets2, weight_type='inverse', reduction='none')
    ok.append(bool(jnp.allclose(got4, ref4, rtol=2e-3, atol=2e-3)))

    assert all(ok), ok
    print("KERNEL_OK")
</pallas_src>

<mosaic_0001>
module attributes {stable_mosaic.version = 11 : i64} {
  func.func @_bce_partial_kernel(%arg0: i32, %arg1: memref<16x8xf32, #tpu.memory_space<vmem>>, %arg2: memref<16x1xi32, #tpu.memory_space<vmem>>, %arg3: memref<1x8xf32, #tpu.memory_space<vmem>>, %arg4: memref<1x1x128xf32, #tpu.memory_space<vmem>>, %arg5: memref<1x1x128xf32, #tpu.memory_space<vmem>>) attributes {dimension_semantics = [#tpu.dimension_semantics<parallel>], iteration_bounds = array<i64: 1>, scalar_prefetch = 0 : i64, scratch_operands = 0 : i64, tpu.core_type = #tpu.core_type<tc>, window_params = [{transform_indices = @transform_0, window_bounds = array<i64: 16, 8>}, {transform_indices = @transform_1, window_bounds = array<i64: 16, 1>}, {pipeline_mode = #tpu.pipeline_mode<synchronous>, transform_indices = @transform_2, window_bounds = array<i64: 1, 8>}, {transform_indices = @transform_3, window_bounds = array<i64: 1, 1, 128>}, {transform_indices = @transform_4, window_bounds = array<i64: 1, 1, 128>}]} {
    %c0 = arith.constant 0 : index
    %c0_0 = arith.constant 0 : index
    %0 = vector.load %arg1[%c0, %c0_0] : memref<16x8xf32, #tpu.memory_space<vmem>>, vector<16x8xf32>
    %cst = arith.constant dense<0xFF800000> : vector<16xf32>
    %1 = vector.multi_reduction <maximumf>, %0, %cst [1] : vector<16x8xf32> to vector<16xf32>
    %2 = vector.shape_cast %1 : vector<16xf32> to vector<16x1xf32>
    %c0_1 = arith.constant 0 : index
    %c0_2 = arith.constant 0 : index
    %3 = vector.load %arg2[%c0_1, %c0_2] : memref<16x1xi32, #tpu.memory_space<vmem>>, vector<16x1xi32>
    %4 = tpu.iota {dimensions = array<i32: 1>} : vector<16x8xi32>
    %5 = vector.broadcast %3 : vector<16x1xi32> to vector<16x8xi32>
    %6 = arith.cmpi eq, %5, %4 : vector<16x8xi32>
    %7 = vector.broadcast %2 : vector<16x1xf32> to vector<16x8xf32>
    %8 = arith.subf %0, %7 : vector<16x8xf32>
    %9 = math.exp %8 : vector<16x8xf32>
    %cst_3 = arith.constant dense<0.000000e+00> : vector<16xf32>
    %10 = vector.multi_reduction <add>, %9, %cst_3 [1] : vector<16x8xf32> to vector<16xf32>
    %11 = vector.shape_cast %10 : vector<16xf32> to vector<16x1xf32>
    %12 = math.log %11 : vector<16x1xf32>
    %cst_4 = arith.constant 0.000000e+00 : f32
    %13 = vector.broadcast %cst_4 : f32 to vector<16x8xf32>
    %14 = arith.select %6, %0, %13 : vector<16x8xi1>, vector<16x8xf32>
    %cst_5 = arith.constant dense<0.000000e+00> : vector<16xf32>
    %15 = vector.multi_reduction <add>, %14, %cst_5 [1] : vector<16x8xf32> to vector<16xf32>
    %16 = vector.shape_cast %15 : vector<16xf32> to vector<16x1xf32>
    %c0_6 = arith.constant 0 : index
    %c0_7 = arith.constant 0 : index
    %17 = vector.load %arg3[%c0_6, %c0_7] : memref<1x8xf32, #tpu.memory_space<vmem>>, vector<1x8xf32>
    %cst_8 = arith.constant 0.000000e+00 : f32
    %18 = vector.shape_cast %17 : vector<1x8xf32> to vector<1x8xf32>
    %19 = vector.broadcast %18 : vector<1x8xf32> to vector<16x8xf32>
    %20 = vector.broadcast %cst_8 : f32 to vector<16x8xf32>
    %21 = arith.select %6, %19, %20 : vector<16x8xi1>, vector<16x8xf32>
    %cst_9 = arith.constant dense<0.000000e+00> : vector<16xf32>
    %22 = vector.multi_reduction <add>, %21, %cst_9 [1] : vector<16x8xf32> to vector<16xf32>
    %23 = vector.shape_cast %22 : vector<16xf32> to vector<16x1xf32>
    %24 = arith.addf %2, %12 : vector<16x1xf32>
    %25 = arith.subf %24, %16 : vector<16x1xf32>
    %26 = arith.mulf %23, %25 : vector<16x1xf32>
    %27 = vector.shape_cast %26 : vector<16x1xf32> to vector<1x16x1xf32>
    %cst_10 = arith.constant dense<0.000000e+00> : vector<1xf32>
    %28 = vector.multi_reduction <add>, %27, %cst_10 [1, 2] : vector<1x16x1xf32> to vector<1xf32>
    %29 = vector.shape_cast %28 : vector<1xf32> to vector<1x1x1xf32>
    %30 = vector.extract %29[0, 0, 0] : f32 from vector<1x1x1xf32>
    %31 = vector.broadcast %30 : f32 to vector<1x1x128xf32>
    %c0_11 = arith.constant 0 : index
    %c0_12 = arith.constant 0 : index
    %c0_13 = arith.constant 0 : index
    %32 = vector.load %arg4[%c0_11, %c0_12, %c0_13] : memref<1x1x128xf32, #tpu.memory_space<vmem>>, vector<1x1x128xf32>
    tpu.vector_store %arg4[%c0_11, %c0_12, %c0_13], %31 {strides = array<i32>} : memref<1x1x128xf32, #tpu.memory_space<vmem>>, vector<1x1x128xf32>,
    %33 = vector.shape_cast %23 : vector<16x1xf32> to vector<1x16x1xf32>
    %cst_14 = arith.constant dense<0.000000e+00> : vector<1xf32>
    %34 = vector.multi_reduction <add>, %33, %cst_14 [1, 2] : vector<1x16x1xf32> to vector<1xf32>
    %35 = vector.shape_cast %34 : vector<1xf32> to vector<1x1x1xf32>
    %36 = vector.extract %35[0, 0, 0] : f32 from vector<1x1x1xf32>
    %37 = vector.broadcast %36 : f32 to vector<1x1x128xf32>
    %c0_15 = arith.constant 0 : index
    %c0_16 = arith.constant 0 : index
    %c0_17 = arith.constant 0 : index
    %38 = vector.load %arg5[%c0_15, %c0_16, %c0_17] : memref<1x1x128xf32, #tpu.memory_space<vmem>>, vector<1x1x128xf32>
    tpu.vector_store %arg5[%c0_15, %c0_16, %c0_17], %37 {strides = array<i32>} : memref<1x1x128xf32, #tpu.memory_space<vmem>>, vector<1x1x128xf32>,
    return
  }
  func.func @transform_0(%arg0: i32) -> (i32, i32) {
    %c0_i32 = arith.constant 0 : i32
    %c0_i32_0 = arith.constant 0 : i32
    return %arg0, %c0_i32 : i32, i32
  }
  func.func @transform_1(%arg0: i32) -> (i32, i32) {
    %c0_i32 = arith.constant 0 : i32
    %c0_i32_0 = arith.constant 0 : i32
    return %arg0, %c0_i32 : i32, i32
  }
  func.func @transform_2(%arg0: i32) -> (i32, i32) {
    %c0_i32 = arith.constant 0 : i32
    %c0_i32_0 = arith.constant 0 : i32
    %c0_i32_1 = arith.constant 0 : i32
    return %c0_i32, %c0_i32_0 : i32, i32
  }
  func.func @transform_3(%arg0: i32) -> (i32, i32, i32) {
    %c0_i32 = arith.constant 0 : i32
    %c0_i32_0 = arith.constant 0 : i32
    %c0_i32_1 = arith.constant 0 : i32
    return %arg0, %c0_i32, %c0_i32_0 : i32, i32, i32
  }
  func.func @transform_4(%arg0: i32) -> (i32, i32, i32) {
    %c0_i32 = arith.constant 0 : i32
    %c0_i32_0 = arith.constant 0 : i32
    %c0_i32_1 = arith.constant 0 : i32
    return %arg0, %c0_i32, %c0_i32_0 : i32, i32, i32
  }
}

</mosaic_0001>

<bundles_post_ra>
// kernel: tpu_custom_call.1
= control target key start
LH: loop header
LB: loop body
LE: loop exit
PB: predicated region body
PF: predicated region fallthrough
CT: control target
= control target key end

     0   :  { %10 = vsyncpa [#allocation3], 0  ;;  %vm20_vm0 = vcmask 64512   ;;  %v203_v4 = vmov 0   ;;  %s260_s0 = inlined_call_operand.vmem [shape: f32[16,8], index: 0, kind: input, shape index: {}]   ;;  %s261_s1 = inlined_call_operand.vmem [shape: s32[16,1], index: 1, kind: input, shape index: {}]   ;;  %s262_s2 = inlined_call_operand.vmem [shape: f32[1,8], index: 2, kind: input, shape index: {}]   ;;  %s263_s3 = inlined_call_operand.hbm [shape: f32[1,1,128], index: 3, kind: output, shape index: {0}]   ;;  %s264_s4 = inlined_call_operand.hbm [shape: f32[1,1,128], index: 4, kind: output, shape index: {1}]  }
   0x1   :  { %v18_v0 = vld [vmem:[%s260_s0] sm:$0xff]  ;;  %v19_v1 = vld [vmem:[%s260_s0 + $0x8] sm:$0xff]  ;;  %149 = vset.pattern.permute.xlu1 %v203_v4  ;;  %150 = vset.pattern.permute.xlu0 %v203_v4 }
   0x2   :  { %v27_v2 = vld [vmem:[%s261_s1] sm:$0xff]  ;;  %v21_v3 = vsel %vm20_vm0, %v18_v0, -inf }
   0x3   :  { %11 = vsyncpa [#allocation5], 0  ;;  %22 = vmax.xlane.f32.xlu0 %v21_v3  ;;  %32 = vperm.xlu1 %149, %v27_v2   ;;  %v24_v5 = vsel %vm20_vm0, %v19_v1, -inf  ;;  %v28_v6 = vld [vmem:[%s261_s1 + $0x8] sm:$0xff]  ;;  %v29_v13 = vlaneseq  ;;  %v141_v24 = vld [vmem:[%s262_s2] ss:$0 sm:$0xff] }
   0x4   :  { %vm84_vm3 = vcmask 7168   ;;  %s204_s2 = smov [#allocation2]   ;;  %s205_s25 = smov [#allocation4]  }
   0x5   :  { %v30_v15 = vand.u32 127, %v29_v13  ;;  %s119_s23 = sshll.u32 %s204_s2, 4  ;;  %s129_s26 = sshll.u32 %s205_s25, 4  ;;  %s120_s23 = int_to_ptr.vmem [resolvable:$true] %s119_s23  ;;  %s130_s26 = int_to_ptr.vmem [resolvable:$true] %s129_s26 }
   0x6   :  { %s159_s27 = scalar_lea.vmem %s120_s23, 16  ;;  %s163_s28 = scalar_lea.vmem %s120_s23, 32 }
   0x7   :  { %25 = vmax.xlane.f32.xlu0 %v24_v5  ;;  %35 = vperm.xlu1 %149, %v28_v6   ;;  %p160_p0 = scmp.ne.s32.totalorder %s120_s23, %s159_s27  ;;  %p164_p1 = scmp.lt.s32.totalorder %s120_s23, %s120_s23 }
   0x8   :  { %p165_p2 = scmp.lt.s32.totalorder %s163_s28, %s159_s27 }
   0xa   :  { %p166_p3 = por %p165_p2, %p164_p1 }
   0xc   :  { %p167_p4 = pnand %p166_p3, %p160_p0 }
  0x7e   :  { %v33_v14 = vpop.permute.xlu1 %32 }
  0x7f   :  { %vm37_vm1 = vcmp.eq.s32.totalorder %v33_v14, %v30_v15 }
  0x80   :  { %v55_v18 = vsel %vm37_vm1, %v18_v0, 0.0  ;;  %v70_v26 = vsel %vm37_vm1, %v141_v24, 0.0 }
  0x81   :  { %v57_v20 = vsel %vm20_vm0, %v55_v18, 0.0  ;;  %v72_v27 = vsel %vm20_vm0, %v70_v26, 0.0 }
  0x82   :  { %v36_v16 = vpop.permute.xlu1 %35 }
  0x83   :  { %vm38_vm2 = vcmp.eq.s32.totalorder %v36_v16, %v30_v15 }
  0x84   :  { %v56_v22 = vsel %vm38_vm2, %v19_v1, 0.0  ;;  %v71_v28 = vsel %vm38_vm2, %v141_v24, 0.0 }
  0x85   :  { %v60_v25 = vsel %vm20_vm0, %v56_v22, 0.0  ;;  %v75_v29 = vsel %vm20_vm0, %v71_v28, 0.0 }
  0x8c   :  { %v23_v7 = vpop.xlane.xlu0 %22 }
  0x8d   :  { %v39_v8 = vsub.f32 %v18_v0, %v23_v7 }
  0x8f   :  { %v41_v9 = vmul.f32 1.442695, %v39_v8 }
  0x90   :  { %v26_v10 = vpop.xlane.xlu0 %25 }
  0x91   :  { %151 = vpow2.f32 %v41_v9  ;;  %v40_v11 = vsub.f32 %v19_v1, %v26_v10 }
  0x93   :  { %v43_v12 = vmul.f32 1.442695, %v40_v11 }
  0x95   :  { %153 = vpow2.f32 %v43_v12 }
  0x9e   :  { %v152_v17 = vpop.eup %151 }
  0x9f   :  { %v45_v19 = vsel %vm20_vm0, %v152_v17, 0.0 }
  0xa0   :  { %46 = vadd.xlane.f32.xlu0 %v45_v19 }
  0xa2   :  { %v154_v21 = vpop.eup %153 }
  0xa3   :  { %v48_v23 = vsel %vm20_vm0, %v154_v21, 0.0 }
  0xa4   :  { %58 = vadd.xlane.f32.xlu0 %v57_v20  ;;  %49 = vadd.xlane.f32.xlu1 %v48_v23 }
  0xa8   :  { %61 = vadd.xlane.f32.xlu0 %v60_v25 }
  0xac   :  { %73 = vadd.xlane.f32.xlu0 %v72_v27 }
  0xb0   :  { %76 = vadd.xlane.f32.xlu0 %v75_v29 }
 0x129   :  { %v47_v30 = vpop.xlane.xlu0 %46 }
 0x12a   :  { %155 = vlog2.f32 %v47_v30 }
 0x12d   :  { %v50_v31 = vpop.xlane.xlu1 %49  ;;  %v59_v32 = vpop.xlane.xlu0 %58 }
 0x12e   :  { %157 = vlog2.f32 %v50_v31 }
 0x131   :  { %v62_v33 = vpop.xlane.xlu0 %61 }
 0x135   :  { %v74_v38 = vpop.xlane.xlu0 %73 }
 0x136   :  { %v99_v50 = vsel %vm84_vm3, %v74_v38, 0.0 }
 0x137   :  { %v156_v34 = vpop.eup %155 }
 0x138   :  { %v52_v35 = vmul.f32 0.6931472, %v156_v34 }
 0x139   :  { %v77_v44 = vpop.xlane.xlu0 %76 }
 0x13a   :  { %v78_v36 = vadd.f32 %v52_v35, %v23_v7  ;;  %v100_v49 = vsel %vm84_vm3, %v77_v44, 0.0 }
 0x13b   :  { %v158_v37 = vpop.eup %157  ;;  %v101_v51 = vadd.f32 %v100_v49, %v99_v50 }
 0x13c   :  { %v54_v39 = vmul.f32 0.6931472, %v158_v37  ;;  %v80_v40 = vsub.f32 %v78_v36, %v59_v32 }
 0x13e   :  { %v79_v41 = vadd.f32 %v54_v39, %v26_v10  ;;  %v82_v43 = vmul.f32 %v80_v40, %v74_v38 }
 0x140   :  { %v81_v42 = vsub.f32 %v79_v41, %v62_v33  ;;  %v85_v46 = vsel %vm84_vm3, %v82_v43, 0.0 }
 0x142   :  { %v83_v45 = vmul.f32 %v81_v42, %v77_v44 }
 0x144   :  { %v86_v47 = vsel %vm84_vm3, %v83_v45, 0.0 }
 0x145   :  { %v87_v48 = vadd.f32 %v86_v47, %v85_v46 }
 0x147   :  { %88 = vadd.xlane.f32.xlu0 %v87_v48 }
 0x14b   :  { %102 = vadd.xlane.f32.xlu0 %v101_v51 }
 0x1d0   :  { %v89_v52 = vpop.xlane.xlu0 %88 }
 0x1d1   :  { %v90_v53 = vrot.slane %v89_v52, 4 }
 0x1d3   :  { %v91_v54 = vadd.f32 %v90_v53, %v89_v52 }
 0x1d4   :  { %v103_v55 = vpop.xlane.xlu0 %102 }
 0x1d5   :  { %v92_v56 = vrot.slane %v91_v54, 2  ;;  %v104_v57 = vrot.slane %v103_v55, 4 }
 0x1d7   :  { %v105_v58 = vadd.f32 %v104_v57, %v103_v55  ;;  %v93_v59 = vadd.f32 %v92_v56, %v91_v54 }
 0x1d9   :  { %v106_v60 = vrot.slane %v105_v58, 2  ;;  %v94_v61 = vrot.slane %v93_v59, 1 }
 0x1db   :  { %v107_v62 = vadd.f32 %v106_v60, %v105_v58  ;;  %v95_v63 = vadd.f32 %v94_v61, %v93_v59 }
 0x1dd   :  { %142 = vpush %v95_v63  ;;  %v108_v0 = vrot.slane %v107_v62, 1 }
 0x1df   :  { %v109_v1 = vadd.f32 %v108_v0, %v107_v62 }
 0x1e1   :  { %144 = vpush %v109_v1 }
 0x20e   :  { %s143_s24 = spop %142 }
 0x20f   :  { %v97_v2 = vstv %s143_s24 }
 0x210   :  { %98 = vst [vmem:[#allocation2] sm:$0x1] %v97_v2 }
 0x211   :  { %170 = shalt.err (!%p167_p4)
}
 0x212   :  { %122 = dma.vmem_to_hbm [thread:$0]  %s120_s23, 16, %s263_s3, [#allocation3]  }
 0x213   :  { %s145_s5 = spop %144  ;;  %s179_s6 = scalar_lea.vmem %s130_s26, 16 }
 0x214   :  { %v111_v3 = vstv %s145_s5  ;;  %p180_p5 = scmp.ne.s32.totalorder %s130_s26, %s179_s6  ;;  %s183_s7 = scalar_lea.vmem %s130_s26, 32 }
 0x215   :  { %112 = vst [vmem:[#allocation4] sm:$0x1] %v111_v3  ;;  %p184_p6 = scmp.lt.s32.totalorder %s130_s26, %s130_s26  ;;  %p185_p7 = scmp.lt.s32.totalorder %s183_s7, %s179_s6 }
 0x217   :  { %p186_p8 = por %p185_p7, %p184_p6 }
 0x219   :  { %p187_p9 = pnand %p186_p8, %p180_p5 }
 0x21b   :  { %190 = shalt.err (!%p187_p9)
}
 0x21c   :  { %132 = dma.vmem_to_hbm [thread:$0]  %s130_s26, 16, %s264_s4, [#allocation5]  }
 0x21d   :  { %199 = dma.done.wait [#allocation3], 16  }
 0x21e   :  { %200 = vsyncadd [#allocation3], 4294967280 }
 0x21f   :  { %201 = dma.done.wait [#allocation5], 16  }
 0x220   :  { %202 = vsyncadd [#allocation5], 4294967280 }
 0x221   :  { %139 = vsyncpa [#allocation3], 1 }
 0x222   :  { %140 = vsyncpa [#allocation5], 1 }

</bundles_post_ra>
